<compile_context>
chip_gen: v7x
topology: tpu7x:2x2x1
jax: 0.10.0
libtpu: 0.0.40
codegen_flags: <defaults>
</compile_context>

<pallas_src>
import jax
import jax.numpy as jnp
from jax.experimental import pallas as pl
from jax.experimental.pallas import tpu as pltpu


def prepare_params(params):
    """One-time prep: PyTorch Linear (out, in)/(out,) -> (in, out)/(1, out).

    Done once per genome, NOT per forward call, so no per-call transpose /
    reshape ops are emitted.
    """
    prepped = []
    for w, b in params:
        prepped.append((jnp.asarray(w, jnp.float32).T,                 # (in, out)
                        jnp.asarray(b, jnp.float32).reshape(1, -1)))   # (1, out)
    return prepped


def _make_mlp_kernel(num_layers, genomes_in_block, batch):
    """Kernel refs: x, (Wt_0, b_0, ..., Wt_{L-1}, b_{L-1}), out.

    x / out blocks are (genomes_in_block * batch, features): the genome axis is
    folded into the matmul M dimension, so each layer is a single MXU matmul.
    The softmax of the original module is over dim=0 of ONE forward pass, i.e.
    over each genome's `batch` consecutive rows, so it is applied per group of
    `batch` rows (static slices, reduction never crosses a block boundary).
    """

    def kernel(*refs):
        x_ref = refs[0]
        out_ref = refs[-1]
        x = x_ref[...]                                   # (G_blk*batch, in_dim)
        for i in range(num_layers):
            wt = refs[1 + 2 * i][...]                    # (in, out), VMEM-resident
            b = refs[2 + 2 * i][...]                     # (1, out)
            x = jnp.dot(x, wt, preferred_element_type=jnp.float32) + b
            x = jnp.maximum(x, 0.0)                      # ReLU

        # Per-genome softmax over dim=0 (the `batch` rows of that forward).
        # Exact division (no approx reciprocal) -> matches torch.softmax.
        parts = []
        for g in range(genomes_in_block):
            r0 = g * batch
            blk = x[r0:r0 + batch, :]
            m = jnp.max(blk, axis=0, keepdims=True)
            e = jnp.exp(blk - m)
            parts.append(e / jnp.sum(e, axis=0, keepdims=True))
        # One dense store of the whole block.
        out_ref[...] = jnp.concatenate(parts, axis=0)

    return kernel


def neat_forward_batched(xs, prepped_params, genomes_per_block=None):
    """Evaluate the genome on G independent input batches in one pallas_call.

    xs: (G, batch, in_dim). Each xs[g] is one forward pass of the original
    module (ReLU MLP, then softmax over dim=0 of that slice).

    genomes_per_block: optional split of the (collapsed) grid into a few big
    blocks (e.g. G//2 on v7x to use both TensorCores). Default: everything in
    a single grid step.
    """
    num_layers = len(prepped_params)
    G, batch, in_dim = xs.shape
    out_dim = prepped_params[-1][0].shape[1]

    # Default: one grid step. Only split if it keeps blocks (8,·)-aligned and
    # divides G evenly; otherwise fall back to the single-step path.
    if (genomes_per_block is None or genomes_per_block >= G
            or G % genomes_per_block != 0
            or (genomes_per_block * batch) % 8 != 0):
        genomes_per_block = G
    num_blocks = G // genomes_per_block
    rows_per_block = genomes_per_block * batch

    # Fold the genome axis into the matmul M dimension (wrapper-side reshape).
    xs_flat = xs.reshape(G * batch, in_dim)

    flat_args = [xs_flat]
    in_specs = [pl.BlockSpec((rows_per_block, in_dim), lambda i: (i, 0))]
    for wt, b in prepped_params:
        flat_args.append(wt)
        flat_args.append(b)
        # Constant block index -> weights/biases stay VMEM-resident.
        in_specs.append(pl.BlockSpec(wt.shape, lambda i: (0, 0)))
        in_specs.append(pl.BlockSpec(b.shape, lambda i: (0, 0)))

    kernel = _make_mlp_kernel(num_layers, genomes_per_block, batch)
    out_flat = pl.pallas_call(
        kernel,
        grid=(num_blocks,),
        out_shape=jax.ShapeDtypeStruct((G * batch, out_dim), jnp.float32),
        in_specs=in_specs,
        out_specs=pl.BlockSpec((rows_per_block, out_dim), lambda i: (i, 0)),
        compiler_params=pltpu.CompilerParams(
            # With a single step this is irrelevant; with >1 big blocks it lets
            # v7x shard them across its two TensorCores (no-op on v5e/v6e).
            dimension_semantics=("arbitrary",) if num_blocks == 1
            else ("parallel",)),
    )(*flat_args)
    return out_flat.reshape(G, batch, out_dim)


def neat_forward(x, prepped_params):
    """Single forward pass with the exact module semantics (x: (batch, in))."""
    return neat_forward_batched(x[None], prepped_params)[0]


def _reference_single(x, params):
    # Pure-JAX reference of the PyTorch forward (params in PyTorch layout).
    for w, b in params:
        x = jnp.maximum(
            jnp.dot(x, w.T, precision=jax.lax.Precision.HIGHEST) + b, 0.0)
    return jax.nn.softmax(x, axis=0)


if __name__ == "__main__":
    key = jax.random.PRNGKey(0)

    # Genome: two linear layers, 16 -> 32 -> 8 (PyTorch Linear layout).
    G, batch, in_dim, hidden, out_dim = 8, 4, 16, 32, 8
    k1, k2, k3, k4, k5 = jax.random.split(key, 5)

    w0 = jax.random.normal(k1, (hidden, in_dim), dtype=jnp.float32) * 0.5
    b0 = jax.random.normal(k2, (hidden,), dtype=jnp.float32) * 0.1
    w1 = jax.random.normal(k3, (out_dim, hidden), dtype=jnp.float32) * 0.5
    b1 = jax.random.normal(k4, (out_dim,), dtype=jnp.float32) * 0.1
    params = [(w0, b0), (w1, b1)]

    # One-time parameter preparation (hoisted out of the per-call path).
    prepped = prepare_params(params)

    # G independent evaluation batches -> a single pallas_call, single grid step.
    xs = jax.random.normal(k5, (G, batch, in_dim), dtype=jnp.float32)

    out = jax.block_until_ready(neat_forward_batched(xs, prepped))
    assert out.shape == (G, batch, out_dim)

    # Reference: each slice must match the PyTorch module's forward.
    ref = jax.vmap(lambda x: _reference_single(x, params))(xs)
    # Tolerance covers only MXU-vs-XLA f32 matmul pass differences; the
    # softmax itself is exact now (no approx reciprocal).
    assert jnp.allclose(out, ref, atol=1e-3, rtol=1e-3), "mismatch vs reference"

    # Exact division -> softmax columns sum to 1 along dim=0 of each forward.
    assert jnp.allclose(out.sum(axis=1), 1.0, atol=1e-4), "softmax not normalized"

    # Single-forward path (original module call signature), also checked.
    out1 = jax.block_until_ready(neat_forward(xs[0], prepped))
    assert out1.shape == (batch, out_dim)
    assert jnp.allclose(out1, ref[0], atol=1e-3, rtol=1e-3), "single-forward mismatch"

    print("KERNEL_OK")
</pallas_src>

<mosaic_0001>
module attributes {stable_mosaic.version = 11 : i64} {
  func.func @kernel(%arg0: i32, %arg1: memref<32x16xf32, #tpu.memory_space<vmem>>, %arg2: memref<16x32xf32, #tpu.memory_space<vmem>>, %arg3: memref<1x32xf32, #tpu.memory_space<vmem>>, %arg4: memref<32x8xf32, #tpu.memory_space<vmem>>, %arg5: memref<1x8xf32, #tpu.memory_space<vmem>>, %arg6: memref<32x8xf32, #tpu.memory_space<vmem>>) attributes {dimension_semantics = [#tpu.dimension_semantics<arbitrary>], iteration_bounds = array<i64: 1>, scalar_prefetch = 0 : i64, scratch_operands = 0 : i64, tpu.core_type = #tpu.core_type<tc>, window_params = [{transform_indices = @transform_0, window_bounds = array<i64: 32, 16>}, {pipeline_mode = #tpu.pipeline_mode<synchronous>, transform_indices = @transform_1, window_bounds = array<i64: 16, 32>}, {pipeline_mode = #tpu.pipeline_mode<synchronous>, transform_indices = @transform_2, window_bounds = array<i64: 1, 32>}, {pipeline_mode = #tpu.pipeline_mode<synchronous>, transform_indices = @transform_3, window_bounds = array<i64: 32, 8>}, {pipeline_mode = #tpu.pipeline_mode<synchronous>, transform_indices = @transform_4, window_bounds = array<i64: 1, 8>}, {transform_indices = @transform_5, window_bounds = array<i64: 32, 8>}]} {
    %c0 = arith.constant 0 : index
    %c0_0 = arith.constant 0 : index
    %0 = vector.load %arg1[%c0, %c0_0] : memref<32x16xf32, #tpu.memory_space<vmem>>, vector<32x16xf32>
    %c0_1 = arith.constant 0 : index
    %c0_2 = arith.constant 0 : index
    %1 = vector.load %arg2[%c0_1, %c0_2] : memref<16x32xf32, #tpu.memory_space<vmem>>, vector<16x32xf32>
    %c0_3 = arith.constant 0 : index
    %c0_4 = arith.constant 0 : index
    %2 = vector.load %arg3[%c0_3, %c0_4] : memref<1x32xf32, #tpu.memory_space<vmem>>, vector<1x32xf32>
    %cst = arith.constant dense<0.000000e+00> : vector<32x32xf32>
    %3 = tpu.matmul %0, %1, %cst {dimension_numbers = #tpu.dot_dimension_numbers<[1], [0], [0], [1], [0, 0, 1, 1], [], []>} : vector<32x16xf32>, vector<16x32xf32>, vector<32x32xf32> -> vector<32x32xf32>
    %4 = vector.broadcast %2 : vector<1x32xf32> to vector<32x32xf32>
    %5 = arith.addf %3, %4 : vector<32x32xf32>
    %cst_5 = arith.constant 0.000000e+00 : f32
    %6 = vector.broadcast %cst_5 : f32 to vector<32x32xf32>
    %7 = arith.maximumf %5, %6 : vector<32x32xf32>
    %c0_6 = arith.constant 0 : index
    %c0_7 = arith.constant 0 : index
    %8 = vector.load %arg4[%c0_6, %c0_7] : memref<32x8xf32, #tpu.memory_space<vmem>>, vector<32x8xf32>
    %c0_8 = arith.constant 0 : index
    %c0_9 = arith.constant 0 : index
    %9 = vector.load %arg5[%c0_8, %c0_9] : memref<1x8xf32, #tpu.memory_space<vmem>>, vector<1x8xf32>
    %cst_10 = arith.constant dense<0.000000e+00> : vector<32x8xf32>
    %10 = tpu.matmul %7, %8, %cst_10 {dimension_numbers = #tpu.dot_dimension_numbers<[1], [0], [0], [1], [0, 0, 1, 1], [], []>} : vector<32x32xf32>, vector<32x8xf32>, vector<32x8xf32> -> vector<32x8xf32>
    %11 = vector.broadcast %9 : vector<1x8xf32> to vector<32x8xf32>
    %12 = arith.addf %10, %11 : vector<32x8xf32>
    %cst_11 = arith.constant 0.000000e+00 : f32
    %13 = vector.broadcast %cst_11 : f32 to vector<32x8xf32>
    %14 = arith.maximumf %12, %13 : vector<32x8xf32>
    %15 = vector.extract_strided_slice %14 {offsets = [0, 0], sizes = [4, 8], strides = [1, 1]} : vector<32x8xf32> to vector<4x8xf32>
    %cst_12 = arith.constant dense<0xFF800000> : vector<8xf32>
    %16 = vector.multi_reduction <maximumf>, %15, %cst_12 [0] : vector<4x8xf32> to vector<8xf32>
    %17 = vector.shape_cast %16 : vector<8xf32> to vector<1x8xf32>
    %18 = vector.broadcast %17 : vector<1x8xf32> to vector<4x8xf32>
    %19 = arith.subf %15, %18 : vector<4x8xf32>
    %20 = math.exp %19 : vector<4x8xf32>
    %cst_13 = arith.constant dense<0.000000e+00> : vector<8xf32>
    %21 = vector.multi_reduction <add>, %20, %cst_13 [0] : vector<4x8xf32> to vector<8xf32>
    %22 = vector.shape_cast %21 : vector<8xf32> to vector<1x8xf32>
    %23 = vector.broadcast %22 : vector<1x8xf32> to vector<4x8xf32>
    %24 = arith.divf %20, %23 : vector<4x8xf32>
    %25 = vector.extract_strided_slice %14 {offsets = [4, 0], sizes = [4, 8], strides = [1, 1]} : vector<32x8xf32> to vector<4x8xf32>
    %cst_14 = arith.constant dense<0xFF800000> : vector<8xf32>
    %26 = vector.multi_reduction <maximumf>, %25, %cst_14 [0] : vector<4x8xf32> to vector<8xf32>
    %27 = vector.shape_cast %26 : vector<8xf32> to vector<1x8xf32>
    %28 = vector.broadcast %27 : vector<1x8xf32> to vector<4x8xf32>
    %29 = arith.subf %25, %28 : vector<4x8xf32>
    %30 = math.exp %29 : vector<4x8xf32>
    %cst_15 = arith.constant dense<0.000000e+00> : vector<8xf32>
    %31 = vector.multi_reduction <add>, %30, %cst_15 [0] : vector<4x8xf32> to vector<8xf32>
    %32 = vector.shape_cast %31 : vector<8xf32> to vector<1x8xf32>
    %33 = vector.broadcast %32 : vector<1x8xf32> to vector<4x8xf32>
    %34 = arith.divf %30, %33 : vector<4x8xf32>
    %35 = vector.extract_strided_slice %14 {offsets = [8, 0], sizes = [4, 8], strides = [1, 1]} : vector<32x8xf32> to vector<4x8xf32>
    %cst_16 = arith.constant dense<0xFF800000> : vector<8xf32>
    %36 = vector.multi_reduction <maximumf>, %35, %cst_16 [0] : vector<4x8xf32> to vector<8xf32>
    %37 = vector.shape_cast %36 : vector<8xf32> to vector<1x8xf32>
    %38 = vector.broadcast %37 : vector<1x8xf32> to vector<4x8xf32>
    %39 = arith.subf %35, %38 : vector<4x8xf32>
    %40 = math.exp %39 : vector<4x8xf32>
    %cst_17 = arith.constant dense<0.000000e+00> : vector<8xf32>
    %41 = vector.multi_reduction <add>, %40, %cst_17 [0] : vector<4x8xf32> to vector<8xf32>
    %42 = vector.shape_cast %41 : vector<8xf32> to vector<1x8xf32>
    %43 = vector.broadcast %42 : vector<1x8xf32> to vector<4x8xf32>
    %44 = arith.divf %40, %43 : vector<4x8xf32>
    %45 = vector.extract_strided_slice %14 {offsets = [12, 0], sizes = [4, 8], strides = [1, 1]} : vector<32x8xf32> to vector<4x8xf32>
    %cst_18 = arith.constant dense<0xFF800000> : vector<8xf32>
    %46 = vector.multi_reduction <maximumf>, %45, %cst_18 [0] : vector<4x8xf32> to vector<8xf32>
    %47 = vector.shape_cast %46 : vector<8xf32> to vector<1x8xf32>
    %48 = vector.broadcast %47 : vector<1x8xf32> to vector<4x8xf32>
    %49 = arith.subf %45, %48 : vector<4x8xf32>
    %50 = math.exp %49 : vector<4x8xf32>
    %cst_19 = arith.constant dense<0.000000e+00> : vector<8xf32>
    %51 = vector.multi_reduction <add>, %50, %cst_19 [0] : vector<4x8xf32> to vector<8xf32>
    %52 = vector.shape_cast %51 : vector<8xf32> to vector<1x8xf32>
    %53 = vector.broadcast %52 : vector<1x8xf32> to vector<4x8xf32>
    %54 = arith.divf %50, %53 : vector<4x8xf32>
    %55 = vector.extract_strided_slice %14 {offsets = [16, 0], sizes = [4, 8], strides = [1, 1]} : vector<32x8xf32> to vector<4x8xf32>
    %cst_20 = arith.constant dense<0xFF800000> : vector<8xf32>
    %56 = vector.multi_reduction <maximumf>, %55, %cst_20 [0] : vector<4x8xf32> to vector<8xf32>
    %57 = vector.shape_cast %56 : vector<8xf32> to vector<1x8xf32>
    %58 = vector.broadcast %57 : vector<1x8xf32> to vector<4x8xf32>
    %59 = arith.subf %55, %58 : vector<4x8xf32>
    %60 = math.exp %59 : vector<4x8xf32>
    %cst_21 = arith.constant dense<0.000000e+00> : vector<8xf32>
    %61 = vector.multi_reduction <add>, %60, %cst_21 [0] : vector<4x8xf32> to vector<8xf32>
    %62 = vector.shape_cast %61 : vector<8xf32> to vector<1x8xf32>
    %63 = vector.broadcast %62 : vector<1x8xf32> to vector<4x8xf32>
    %64 = arith.divf %60, %63 : vector<4x8xf32>
    %65 = vector.extract_strided_slice %14 {offsets = [20, 0], sizes = [4, 8], strides = [1, 1]} : vector<32x8xf32> to vector<4x8xf32>
    %cst_22 = arith.constant dense<0xFF800000> : vector<8xf32>
    %66 = vector.multi_reduction <maximumf>, %65, %cst_22 [0] : vector<4x8xf32> to vector<8xf32>
    %67 = vector.shape_cast %66 : vector<8xf32> to vector<1x8xf32>
    %68 = vector.broadcast %67 : vector<1x8xf32> to vector<4x8xf32>
    %69 = arith.subf %65, %68 : vector<4x8xf32>
    %70 = math.exp %69 : vector<4x8xf32>
    %cst_23 = arith.constant dense<0.000000e+00> : vector<8xf32>
    %71 = vector.multi_reduction <add>, %70, %cst_23 [0] : vector<4x8xf32> to vector<8xf32>
    %72 = vector.shape_cast %71 : vector<8xf32> to vector<1x8xf32>
    %73 = vector.broadcast %72 : vector<1x8xf32> to vector<4x8xf32>
    %74 = arith.divf %70, %73 : vector<4x8xf32>
    %75 = vector.extract_strided_slice %14 {offsets = [24, 0], sizes = [4, 8], strides = [1, 1]} : vector<32x8xf32> to vector<4x8xf32>
    %cst_24 = arith.constant dense<0xFF800000> : vector<8xf32>
    %76 = vector.multi_reduction <maximumf>, %75, %cst_24 [0] : vector<4x8xf32> to vector<8xf32>
    %77 = vector.shape_cast %76 : vector<8xf32> to vector<1x8xf32>
    %78 = vector.broadcast %77 : vector<1x8xf32> to vector<4x8xf32>
    %79 = arith.subf %75, %78 : vector<4x8xf32>
    %80 = math.exp %79 : vector<4x8xf32>
    %cst_25 = arith.constant dense<0.000000e+00> : vector<8xf32>
    %81 = vector.multi_reduction <add>, %80, %cst_25 [0] : vector<4x8xf32> to vector<8xf32>
    %82 = vector.shape_cast %81 : vector<8xf32> to vector<1x8xf32>
    %83 = vector.broadcast %82 : vector<1x8xf32> to vector<4x8xf32>
    %84 = arith.divf %80, %83 : vector<4x8xf32>
    %85 = vector.extract_strided_slice %14 {offsets = [28, 0], sizes = [4, 8], strides = [1, 1]} : vector<32x8xf32> to vector<4x8xf32>
    %cst_26 = arith.constant dense<0xFF800000> : vector<8xf32>
    %86 = vector.multi_reduction <maximumf>, %85, %cst_26 [0] : vector<4x8xf32> to vector<8xf32>
    %87 = vector.shape_cast %86 : vector<8xf32> to vector<1x8xf32>
    %88 = vector.broadcast %87 : vector<1x8xf32> to vector<4x8xf32>
    %89 = arith.subf %85, %88 : vector<4x8xf32>
    %90 = math.exp %89 : vector<4x8xf32>
    %cst_27 = arith.constant dense<0.000000e+00> : vector<8xf32>
    %91 = vector.multi_reduction <add>, %90, %cst_27 [0] : vector<4x8xf32> to vector<8xf32>
    %92 = vector.shape_cast %91 : vector<8xf32> to vector<1x8xf32>
    %93 = vector.broadcast %92 : vector<1x8xf32> to vector<4x8xf32>
    %94 = arith.divf %90, %93 : vector<4x8xf32>
    %95 = tpu.concatenate %24, %34, %44, %54, %64, %74, %84, %94 in 0 : vector<4x8xf32>, vector<4x8xf32>, vector<4x8xf32>, vector<4x8xf32>, vector<4x8xf32>, vector<4x8xf32>, vector<4x8xf32>, vector<4x8xf32> -> vector<32x8xf32>
    %c0_28 = arith.constant 0 : index
    %c0_29 = arith.constant 0 : index
    %96 = vector.load %arg6[%c0_28, %c0_29] : memref<32x8xf32, #tpu.memory_space<vmem>>, vector<32x8xf32>
    tpu.vector_store %arg6[%c0_28, %c0_29], %95 {strides = array<i32>} : memref<32x8xf32, #tpu.memory_space<vmem>>, vector<32x8xf32>,
    return
  }
  func.func @transform_0(%arg0: i32) -> (i32, i32) {
    %c0_i32 = arith.constant 0 : i32
    %c0_i32_0 = arith.constant 0 : i32
    return %arg0, %c0_i32 : i32, i32
  }
  func.func @transform_1(%arg0: i32) -> (i32, i32) {
    %c0_i32 = arith.constant 0 : i32
    %c0_i32_0 = arith.constant 0 : i32
    %c0_i32_1 = arith.constant 0 : i32
    return %c0_i32, %c0_i32_0 : i32, i32
  }
  func.func @transform_2(%arg0: i32) -> (i32, i32) {
    %c0_i32 = arith.constant 0 : i32
    %c0_i32_0 = arith.constant 0 : i32
    %c0_i32_1 = arith.constant 0 : i32
    return %c0_i32, %c0_i32_0 : i32, i32
  }
  func.func @transform_3(%arg0: i32) -> (i32, i32) {
    %c0_i32 = arith.constant 0 : i32
    %c0_i32_0 = arith.constant 0 : i32
    %c0_i32_1 = arith.constant 0 : i32
    return %c0_i32, %c0_i32_0 : i32, i32
  }
  func.func @transform_4(%arg0: i32) -> (i32, i32) {
    %c0_i32 = arith.constant 0 : i32
    %c0_i32_0 = arith.constant 0 : i32
    %c0_i32_1 = arith.constant 0 : i32
    return %c0_i32, %c0_i32_0 : i32, i32
  }
  func.func @transform_5(%arg0: i32) -> (i32, i32) {
    %c0_i32 = arith.constant 0 : i32
    %c0_i32_0 = arith.constant 0 : i32
    return %arg0, %c0_i32 : i32, i32
  }
}

</mosaic_0001>

<bundles_post_ra>
// kernel: tpu_custom_call.1
= control target key start
LH: loop header
LB: loop body
LE: loop exit
PB: predicated region body
PF: predicated region fallthrough
CT: control target
= control target key end

     0   :  { %vm33_vm0 = vcmask 130048   ;;  %vm146_vm1 = vcmask 261120   ;;  %vm248_vm2 = vcmask 60416   ;;  %vm268_vm3 = vcmask 64516   ;;  %s670_s1 = inlined_call_operand.vmem [shape: f32[16,32], index: 1, kind: input, shape index: {}]   ;;  %s671_s0 = inlined_call_operand.vmem [shape: f32[32,16], index: 0, kind: input, shape index: {}]   ;;  %s672_s3 = inlined_call_operand.vmem [shape: f32[32,8], index: 3, kind: input, shape index: {}]   ;;  %s673_s2 = inlined_call_operand.vmem [shape: f32[1,32], index: 2, kind: input, shape index: {}]   ;;  %s674_s4 = inlined_call_operand.vmem [shape: f32[1,8], index: 4, kind: input, shape index: {}]   ;;  %s675_s5 = inlined_call_operand.vmem [shape: f32[32,8], index: 5, kind: output, shape index: {}]  }
   0x1   :  { %v24_v0 = vld [vmem:[%s670_s1] sm:$0xff]  ;;  %v25_v1 = vld [vmem:[%s670_s1 + $0x8] sm:$0xff]  ;;  %v22_v8 = vld [vmem:[%s671_s0 + $0x10] sm:$0xff]  ;;  %vm414_vm4 = vcmask 1043456   ;;  %vm419_vm5 = vcmask 64512  }
   0x2   :  { %v20_v2 = vld [vmem:[%s671_s0] sm:$0xff]  ;;  %v476_v3 = vpack.c.bf16 %v25_v1, %v24_v0  ;;  %v136_v5 = vld [vmem:[%s672_s3 + $0x8] sm:$0xff]  ;;  %v23_v9 = vld [vmem:[%s671_s0 + $0x18] sm:$0xff] }
   0x3   :  { %456 = vmatprep.mubr.msk.f32.mxu0 %vm33_vm0, %v20_v2  ;;  %v135_v4 = vld [vmem:[%s672_s3] sm:$0xff]  ;;  %v21_v7 = vld [vmem:[%s671_s0 + $0x8] sm:$0xff]  ;;  %v137_v10 = vld [vmem:[%s672_s3 + $0x10] sm:$0xff] }
   0x4   :  { %477 = vmatprep.subr.bf16.mxu0 %v476_v3  ;;  %v480_v6 = vpack.c.bf16 %v136_v5, %v135_v4  ;;  %v138_v11 = vld [vmem:[%s672_s3 + $0x18] sm:$0xff]  ;;  %v428_v13 = vld [vmem:[%s673_s2] ss:$0 sm:$0xff] }
   0x5   :  { %479 = vmatpush3.bf16.msra.mxu0 %v476_v3  ;;  %v484_v12 = vpack.c.bf16 %v138_v11, %v137_v10  ;;  %v433_v26 = vld [vmem:[%s674_s4] ss:$0 sm:$0xff] }
   0x6   :  { %481 = vmatprep.subr.bf16.mxu1 %v480_v6 }
   0x7   :  { %483 = vmatpush3.bf16.msra.mxu1 %v480_v6 }
   0x8   :  { %457 = vmatmul.mubr.msk.f32.vlgmr.msra.gmra.mrb[0].mxu0 %vm33_vm0, %v21_v7  ;;  %485 = vmatprep.subr.bf16.mxu1 %v484_v12 }
   0x9   :  { %459 = vmatprep.mubr.msk.f32.mxu0 %vm33_vm0, %v22_v8 }
   0xb   :  { %487 = vmatpush3.bf16.msra.mxu1 %v484_v12 }
   0xc   :  { %460 = vmatmul.mubr.msk.f32.gmra.mrb[2].mxu0 %vm33_vm0, %v23_v9 }
  0xdb   :  { %v458_v14 = vpop.f32.mrb[0].mxu0 }
  0xdc   :  { %v118_v15 = vadd.f32 %v458_v14, %v428_v13  ;;  %v112_v16 = vpop.f32.mrb[1].mxu0 }
  0xdd   :  { %v113_v17 = vadd.f32 %v428_v13, %v112_v16 }
  0xde   :  { %v132_v20 = vmax.f32 %v118_v15, 0.0 }
  0xdf   :  { %v131_v18 = vmax.f32 %v113_v17, 0.0  ;;  %v461_v19 = vpop.f32.mrb[2].mxu0 }
  0xe0   :  { %v128_v21 = vadd.f32 %v461_v19, %v428_v13  ;;  %v122_v22 = vpop.f32.mrb[3].mxu0 }
  0xe1   :  { %v123_v23 = vadd.f32 %v428_v13, %v122_v22  ;;  %470 = vmatprep.mubr.msk.f32.mxu1 %vm146_vm1, %v131_v18 }
  0xe2   :  { %471 = vmatmul.mubr.msk.f32.vlgmr.msra.gmra.mrb[0].mxu1 %vm146_vm1, %v132_v20  ;;  %v134_v25 = vmax.f32 %v128_v21, 0.0 }
  0xe3   :  { %v133_v24 = vmax.f32 %v123_v23, 0.0 }
  0xe5   :  { %473 = vmatprep.mubr.msk.f32.mxu1 %vm146_vm1, %v133_v24 }
  0xe6   :  { %474 = vmatmul.mubr.msk.f32.gmra.mrb[2].mxu1 %vm146_vm1, %v134_v25 }
 0x1b5   :  { %v472_v27 = vpop.f32.mrb[0].mxu1 }
 0x1b6   :  { %v231_v28 = vadd.f32 %v472_v27, %v433_v26  ;;  %v225_v29 = vpop.f32.mrb[1].mxu1 }
 0x1b7   :  { %v226_v30 = vadd.f32 %v433_v26, %v225_v29 }
 0x1b8   :  { %v245_v31 = vmax.f32 %v231_v28, 0.0 }
 0x1b9   :  { %v590_v32 = vmax.f32 %v226_v30, 0.0  ;;  %v475_v33 = vpop.f32.mrb[2].mxu1 }
 0x1ba   :  { %v291_v34 = vsel %vm248_vm2, %v245_v31, -inf  ;;  %v310_v35 = vsel %vm268_vm3, %v245_v31, -inf  ;;  %v241_v36 = vadd.f32 %v475_v33, %v433_v26  ;;  %v235_v37 = vpop.f32.mrb[3].mxu1 }
 0x1bb   :  { %v292_v38 = vrot.slane %v291_v34, 4  ;;  %v311_v39 = vrot.slane %v310_v35, 4  ;;  %v249_v40 = vsel %vm248_vm2, %v590_v32, -inf  ;;  %v269_v41 = vsel %vm268_vm3, %v590_v32, -inf }
 0x1bc   :  { %v250_v42 = vrot.slane %v249_v40, 4  ;;  %v270_v43 = vrot.slane %v269_v41, 4  ;;  %v598_v44 = vmax.f32 %v241_v36, 0.0  ;;  %v236_v45 = vadd.f32 %v433_v26, %v235_v37 }
 0x1bd   :  { %v293_v46 = vmax.f32 %v291_v34, %v292_v38  ;;  %v312_v47 = vmax.f32 %v310_v35, %v311_v39 }
 0x1be   :  { %v251_v48 = vmax.f32 %v249_v40, %v250_v42  ;;  %v271_v49 = vmax.f32 %v269_v41, %v270_v43  ;;  %v373_v50 = vsel %vm248_vm2, %v598_v44, -inf  ;;  %v392_v51 = vsel %vm268_vm3, %v598_v44, -inf }
 0x1bf   :  { %v294_v52 = vrot.slane %v293_v46, 2  ;;  %v313_v53 = vrot.slane %v312_v47, 2  ;;  %v374_v54 = vrot.slane %v373_v50, 4  ;;  %v393_v55 = vrot.slane %v392_v51, 4 }
 0x1c0   :  { %v252_v56 = vrot.slane %v251_v48, 2  ;;  %v272_v57 = vrot.slane %v271_v49, 2  ;;  %v246_v58 = vmax.f32 %v236_v45, 0.0 }
 0x1c1   :  { %v295_v59 = vmax.f32 %v293_v46, %v294_v52  ;;  %v314_v60 = vmax.f32 %v312_v47, %v313_v53  ;;  %v375_v61 = vmax.f32 %v373_v50, %v374_v54  ;;  %v394_v62 = vmax.f32 %v392_v51, %v393_v55 }
 0x1c2   :  { %v253_v63 = vmax.f32 %v251_v48, %v252_v56  ;;  %v273_v0 = vmax.f32 %v271_v49, %v272_v57  ;;  %v332_v1 = vsel %vm248_vm2, %v246_v58, -inf  ;;  %v351_v2 = vsel %vm268_vm3, %v246_v58, -inf }
 0x1c3   :  { %v296_v3 = vrot.slane %v295_v59, 1  ;;  %v315_v4 = vrot.slane %v314_v60, 1  ;;  %v376_v5 = vrot.slane %v375_v61, 2  ;;  %v395_v6 = vrot.slane %v394_v62, 2 }
 0x1c4   :  { %v254_v7 = vrot.slane %v253_v63, 1  ;;  %v274_v8 = vrot.slane %v273_v0, 1  ;;  %v333_v9 = vrot.slane %v332_v1, 4  ;;  %v352_v10 = vrot.slane %v351_v2, 4 }
 0x1c5   :  { %v297_v11 = vmax.f32 %v295_v59, %v296_v3  ;;  %v316_v12 = vmax.f32 %v314_v60, %v315_v4  ;;  %v377_v13 = vmax.f32 %v375_v61, %v376_v5  ;;  %v396_v14 = vmax.f32 %v394_v62, %v395_v6 }
 0x1c6   :  { %v255_v15 = vmax.f32 %v253_v63, %v254_v7  ;;  %v275_v16 = vmax.f32 %v273_v0, %v274_v8  ;;  %v334_v17 = vmax.f32 %v332_v1, %v333_v9  ;;  %v353_v18 = vmax.f32 %v351_v2, %v352_v10 }
 0x1c7   :  { %v298_v19 = vsub.f32 %v245_v31, %v297_v11  ;;  %v317_v20 = vsub.f32 %v245_v31, %v316_v12  ;;  %v378_v21 = vrot.slane %v377_v13, 1  ;;  %v397_v22 = vrot.slane %v396_v14, 1 }
 0x1c8   :  { %v256_v23 = vsub.f32 %v590_v32, %v255_v15  ;;  %v276_v24 = vsub.f32 %v590_v32, %v275_v16  ;;  %v335_v25 = vrot.slane %v334_v17, 2  ;;  %v354_v26 = vrot.slane %v353_v18, 2 }
 0x1c9   :  { %v299_v27 = vmul.f32 1.442695, %v298_v19  ;;  %v318_v28 = vmul.f32 1.442695, %v317_v20  ;;  %v379_v29 = vmax.f32 %v377_v13, %v378_v21  ;;  %v398_v30 = vmax.f32 %v396_v14, %v397_v22 }
 0x1ca   :  { %v257_v33 = vmul.f32 1.442695, %v256_v23  ;;  %v277_v34 = vmul.f32 1.442695, %v276_v24  ;;  %v336_v35 = vmax.f32 %v334_v17, %v335_v25  ;;  %v355_v36 = vmax.f32 %v353_v18, %v354_v26 }
 0x1cb   :  { %488 = vpow2.f32 %v299_v27  ;;  %v380_v37 = vsub.f32 %v598_v44, %v379_v29  ;;  %v399_v31 = vsub.f32 %v598_v44, %v398_v30 }
 0x1cc   :  { %490 = vpow2.f32 %v318_v28  ;;  %v337_v38 = vrot.slane %v336_v35, 1  ;;  %v356_v39 = vrot.slane %v355_v36, 1 }
 0x1cd   :  { %492 = vpow2.f32 %v257_v33  ;;  %v381_v32 = vmul.f32 1.442695, %v380_v37  ;;  %v400_v40 = vmul.f32 1.442695, %v399_v31 }
 0x1ce   :  { %494 = vpow2.f32 %v277_v34  ;;  %v338_v41 = vmax.f32 %v336_v35, %v337_v38  ;;  %v357_v42 = vmax.f32 %v355_v36, %v356_v39 }
 0x1cf   :  { %496 = vpow2.f32 %v381_v32 }
 0x1d0   :  { %498 = vpow2.f32 %v400_v40  ;;  %v339_v43 = vsub.f32 %v246_v58, %v338_v41  ;;  %v358_v45 = vsub.f32 %v246_v58, %v357_v42 }
 0x1d2   :  { %v340_v46 = vmul.f32 1.442695, %v339_v43  ;;  %v359_v47 = vmul.f32 1.442695, %v358_v45 }
 0x1d4   :  { %500 = vpow2.f32 %v340_v46 }
 0x1d5   :  { %v610_v48 = vpop.eup %488  ;;  %502 = vpow2.f32 %v359_v47 }
 0x1d6   :  { %v612_v44 = vpop.eup %490  ;;  %v301_v49 = vsel %vm248_vm2, %v610_v48, 0.0 }
 0x1d7   :  { %v616_v50 = vpop.eup %492  ;;  %v302_v51 = vrot.slane %v301_v49, 4  ;;  %v321_v52 = vrot.slane %v612_v44, 4 }
 0x1d8   :  { %v619_v53 = vpop.eup %494  ;;  %v259_v54 = vsel %vm248_vm2, %v616_v50, 0.0 }
 0x1d9   :  { %v623_v55 = vpop.eup %496  ;;  %v303_v56 = vadd.f32 %v302_v51, %v301_v49  ;;  %v323_v57 = vsel %vm248_vm2, %v321_v52, 0.0  ;;  %v260_v58 = vrot.slane %v259_v54, 4  ;;  %v280_v59 = vrot.slane %v619_v53, 4 }
 0x1da   :  { %v627_v60 = vpop.eup %498  ;;  %v324_v61 = vrot.slane %v323_v57, 4  ;;  %v383_v62 = vsel %vm248_vm2, %v623_v55, 0.0 }
 0x1db   :  { %v304_v63 = vrot.slane %v303_v56, 2  ;;  %v261_v0 = vadd.f32 %v260_v58, %v259_v54  ;;  %v282_v1 = vsel %vm248_vm2, %v280_v59, 0.0  ;;  %v384_v2 = vrot.slane %v383_v62, 4 }
 0x1dc   :  { %v325_v3 = vadd.f32 %v324_v61, %v323_v57  ;;  %v283_v4 = vrot.slane %v282_v1, 4  ;;  %v403_v5 = vrot.slane %v627_v60, 4 }
 0x1dd   :  { %v305_v6 = vadd.f32 %v304_v63, %v303_v56  ;;  %v262_v7 = vrot.slane %v261_v0, 2  ;;  %v385_v8 = vadd.f32 %v384_v2, %v383_v62 }
 0x1de   :  { %v633_v9 = vpop.eup %500  ;;  %v326_v10 = vrot.slane %v325_v3, 2  ;;  %v284_v11 = vadd.f32 %v283_v4, %v282_v1  ;;  %v405_v12 = vsel %vm248_vm2, %v403_v5, 0.0 }
 0x1df   :  { %v636_v13 = vpop.eup %502  ;;  %v306_v14 = vrot.slane %v305_v6, 1  ;;  %v263_v15 = vadd.f32 %v262_v7, %v261_v0  ;;  %v386_v16 = vrot.slane %v385_v8, 2  ;;  %v406_v17 = vrot.slane %v405_v12, 4 }
 0x1e0   :  { %v327_v18 = vadd.f32 %v326_v10, %v325_v3  ;;  %v285_v19 = vrot.slane %v284_v11, 2  ;;  %v342_v20 = vsel %vm248_vm2, %v633_v9, 0.0  ;;  %v362_v21 = vrot.slane %v636_v13, 4 }
 0x1e1   :  { %v307_v22 = vadd.f32 %v306_v14, %v305_v6  ;;  %v264_v23 = vrot.slane %v263_v15, 1  ;;  %v387_v24 = vadd.f32 %v386_v16, %v385_v8  ;;  %v407_v25 = vadd.f32 %v406_v17, %v405_v12 }
 0x1e2   :  { %v328_v26 = vrot.slane %v327_v18, 1  ;;  %v286_v27 = vadd.f32 %v285_v19, %v284_v11  ;;  %v343_v28 = vrot.slane %v342_v20, 4  ;;  %v364_v29 = vsel %vm248_vm2, %v362_v21, 0.0 }
 0x1e3   :  { %504 = vrcp.f32 %v307_v22  ;;  %v265_v30 = vadd.f32 %v264_v23, %v263_v15  ;;  %v388_v33 = vrot.slane %v387_v24, 1  ;;  %v408_v34 = vrot.slane %v407_v25, 2 }
 0x1e4   :  { %v329_v35 = vadd.f32 %v328_v26, %v327_v18  ;;  %v287_v36 = vrot.slane %v286_v27, 1  ;;  %v344_v37 = vadd.f32 %v343_v28, %v342_v20  ;;  %v365_v31 = vrot.slane %v364_v29, 4 }
 0x1e5   :  { %506 = vrcp.f32 %v265_v30  ;;  %v389_v38 = vadd.f32 %v388_v33, %v387_v24  ;;  %v409_v39 = vadd.f32 %v408_v34, %v407_v25 }
 0x1e6   :  { %508 = vrcp.f32 %v329_v35  ;;  %v288_v32 = vadd.f32 %v287_v36, %v286_v27  ;;  %v345_v40 = vrot.slane %v344_v37, 2  ;;  %v366_v41 = vadd.f32 %v365_v31, %v364_v29 }
 0x1e7   :  { %v410_v42 = vrot.slane %v409_v39, 1 }
 0x1e8   :  { %510 = vrcp.f32 %v288_v32  ;;  %v346_v43 = vadd.f32 %v345_v40, %v344_v37  ;;  %v367_v45 = vrot.slane %v366_v41, 2 }
 0x1e9   :  { %512 = vrcp.f32 %v389_v38  ;;  %v411_v46 = vadd.f32 %v410_v42, %v409_v39 }
 0x1ea   :  { %v347_v47 = vrot.slane %v346_v43, 1  ;;  %v368_v49 = vadd.f32 %v367_v45, %v366_v41 }
 0x1eb   :  { %514 = vrcp.f32 %v411_v46 }
 0x1ec   :  { %v348_v51 = vadd.f32 %v347_v47, %v346_v43  ;;  %v369_v52 = vrot.slane %v368_v49, 1 }
 0x1ed   :  { %v505_v54 = vpop.eup %504 }
 0x1ee   :  { %516 = vrcp.f32 %v348_v51  ;;  %v370_v56 = vadd.f32 %v369_v52, %v368_v49  ;;  %v309_v59 = vmul.f32 %v505_v54, %v610_v48 }
 0x1ef   :  { %v507_v57 = vpop.eup %506 }
 0x1f0   :  { %v509_v58 = vpop.eup %508  ;;  %518 = vrcp.f32 %v370_v56  ;;  %v267_v1 = vmul.f32 %v507_v57, %v616_v50 }
 0x1f1   :  { %v331_v61 = vmul.f32 %v509_v58, %v612_v44 }
 0x1f2   :  { %v511_v62 = vpop.eup %510 }
 0x1f3   :  { %v513_v63 = vpop.eup %512  ;;  %v416_v0 = vsel %vm414_vm4, %v309_v59, %v331_v61  ;;  %v290_v2 = vmul.f32 %v511_v62, %v619_v53 }
 0x1f4   :  { %421 = vst.msk [vmem:[%s675_s5 + $0x8] sm:$0xff] %vm419_vm5, %v416_v0  ;;  %v391_v48 = vmul.f32 %v513_v63, %v623_v55 }
 0x1f5   :  { %v515_v3 = vpop.eup %514  ;;  %v415_v4 = vsel %vm414_vm4, %v267_v1, %v290_v2 }
 0x1f6   :  { %420 = vst.msk [vmem:[%s675_s5] sm:$0xff] %vm419_vm5, %v415_v4  ;;  %v413_v44 = vmul.f32 %v515_v3, %v627_v60 }
 0x1f8   :  { %v517_v50 = vpop.eup %516  ;;  %v418_v53 = vsel %vm414_vm4, %v391_v48, %v413_v44 }
 0x1f9   :  { %423 = vst.msk [vmem:[%s675_s5 + $0x18] sm:$0xff] %vm419_vm5, %v418_v53  ;;  %v350_v6 = vmul.f32 %v517_v50, %v633_v9 }
 0x1fa   :  { %v519_v5 = vpop.eup %518 }
 0x1fb   :  { %v372_v7 = vmul.f32 %v519_v5, %v636_v13 }
 0x1fd   :  { %v417_v8 = vsel %vm414_vm4, %v350_v6, %v372_v7 }
 0x1fe   :  { %422 = vst.msk [vmem:[%s675_s5 + $0x10] sm:$0xff] %vm419_vm5, %v417_v8 }

</bundles_post_ra>
